<compile_context>
chip_gen: v6e
topology: v6e:2x2x1
jax: 0.10.0
libtpu: 0.0.40
codegen_flags: <defaults>
</compile_context>

<pallas_src>
import functools

import numpy as np
import jax
import jax.numpy as jnp
from jax.experimental import pallas as pl
from jax.experimental.pallas import tpu as pltpu


# ---------------------------------------------------------------------------
# Cached hardware queries
# ---------------------------------------------------------------------------

@functools.lru_cache(maxsize=None)
def _vmem_capacity_bytes():
    """Physical VMEM of the local TPU generation (64 MiB fallback = v7x)."""
    try:
        return int(pltpu.get_tpu_info().vmem_capacity_bytes)
    except Exception:
        return 64 * 1024 * 1024


@functools.lru_cache(maxsize=None)
def _roll_is_numpy_convention():
    """One-time probe: does pltpu.roll(x, s) == np.roll(x, s) on this HW?"""
    def k(x_ref, o_ref):
        o_ref[...] = pltpu.roll(x_ref[...], 1, axis=1)

    x = jnp.asarray(np.tile(np.arange(128, dtype=np.int32), (8, 1)))
    out = pl.pallas_call(
        k, out_shape=jax.ShapeDtypeStruct((8, 128), jnp.int32))(x)
    return int(out[0, 0]) == 127   # np.roll(+1) puts the last element at 0


def _hw_shift(shift, size):
    """Static roll amount that realises np.roll(x, shift, -1) on this HW."""
    shift = int(shift) % size
    if shift == 0 or 2 * shift == size:      # identity / self-inverse shifts
        return shift
    return shift if _roll_is_numpy_convention() else size - shift


# ---------------------------------------------------------------------------
# Kernel
# ---------------------------------------------------------------------------

def _cutperm_kernel(*refs, shifts, use_sel, use_keep, block_rows):
    """refs = ([sel (1,L) i32]?, [keep (R_pad,1) f32]?, x (tb,L), o (tb,L)).

    shifts: static roll amounts of the flattened spatial axis.
      use_sel=True : shifts = (s_plus, s_minus); out = where(sel, roll(s_plus),
                     roll(s_minus)) -- W half-swap, optionally with the H
                     half-swap folded into the roll amounts (aug_index == 3).
      use_sel=False: shifts = (L/2,); single roll -- H half-swap only.
    """
    i = 0
    sel_ref = keep_ref = None
    if use_sel:
        sel_ref = refs[i]
        i += 1
    if use_keep:
        keep_ref = refs[i]
        i += 1
    x_ref, o_ref = refs[i], refs[i + 1]

    x = x_ref[...]

    if use_sel:
        # Two XLU lane rolls + one per-lane select; hidden under the HBM DMA.
        r_plus = pltpu.roll(x, shifts[0], axis=1)
        r_minus = pltpu.roll(x, shifts[1], axis=1)
        perm = jnp.where(sel_ref[...] != 0, r_plus, r_minus)
    else:
        # jig_h only: swap top/bottom halves == roll flat spatial axis by L/2.
        perm = pltpu.roll(x, shifts[0], axis=1)

    if use_keep:
        start = pl.multiple_of(pl.program_id(0) * block_rows, 8)
        # Exact for a 0/1 bernoulli mask (soft masks would change semantics).
        keep = keep_ref[pl.ds(start, block_rows), :] > 0.0
        o_ref[...] = jnp.where(keep, x, perm)
    else:
        o_ref[...] = perm


# ---------------------------------------------------------------------------
# Block sizing
# ---------------------------------------------------------------------------

def _pick_block_rows(num_rows, row_bytes, itemsize, vmem_bytes):
    """Rows per grid block.

    Targets ~4 MiB payload per block (8 MiB when VMEM >= 100 MiB, i.e.
    v5e/v6e), keeps the per-block working set (in/out double buffers + roll
    temporaries ~= 7x block) under ~75% of VMEM, rounds to the dtype's
    sublane packing, and keeps >= 2 grid steps so both v7x TensorCores get
    work and the DMA pipeline has something to overlap.
    """
    packing = max(1, 4 // max(int(itemsize), 1))
    mult = 8 * packing
    if num_rows <= mult:
        return num_rows

    target = (8 << 20) if vmem_bytes >= (100 << 20) else (4 << 20)
    cap = (vmem_bytes * 3 // 4) // 7
    rows = max(1, min(target, cap) // max(row_bytes, 1))
    rows = min(rows, (num_rows + 1) // 2)            # >= 2 grid steps
    rows = max(mult, (rows // mult) * mult)
    return min(rows, num_rows)


# ---------------------------------------------------------------------------
# pallas_call wrapper
# ---------------------------------------------------------------------------

@functools.partial(jax.jit, static_argnames=("shifts", "tb", "vmem_cap"))
def _cutperm_call(x, mask, *, shifts, tb, vmem_cap):
    N, C, H, W = x.shape
    R, L = N * C, H * W
    itemsize = np.dtype(x.dtype).itemsize
    use_sel = len(shifts) == 2
    use_keep = mask is not None

    grid_n = -(-R // tb)
    r_pad = grid_n * tb

    x2 = x.reshape(R, L)                              # bitcast under jit

    args, in_specs = [], []
    if use_sel:
        sel = jnp.asarray(
            ((np.arange(L, dtype=np.int32) % W) < (W // 2))
            .astype(np.int32).reshape(1, L))
        args.append(sel)
        in_specs.append(pl.BlockSpec((1, L), lambda b: (0, 0)))       # resident
    if use_keep:
        keep_rows = jnp.repeat(mask.astype(jnp.float32), C).reshape(R, 1)
        if r_pad != R:
            keep_rows = jnp.pad(keep_rows, ((0, r_pad - R), (0, 0)))
        args.append(keep_rows)
        in_specs.append(pl.BlockSpec((r_pad, 1), lambda b: (0, 0)))   # resident
    args.append(x2)
    in_specs.append(pl.BlockSpec((tb, L), lambda b: (b, 0)))

    # VMEM limit from the actual footprint (double buffers + roll temps),
    # clamped to the physical capacity of this TPU generation.
    block_bytes = tb * L * itemsize
    resident = 0
    if use_sel:
        resident += 2 * 8 * (-(-L // 128) * 128) * 4
    if use_keep:
        resident += 2 * (-(-r_pad // 8) * 8) * 128 * 4
    vmem_limit = int(min(vmem_cap,
                         max(32 << 20, 8 * block_bytes + resident + (4 << 20))))

    kernel = functools.partial(_cutperm_kernel, shifts=shifts, use_sel=use_sel,
                               use_keep=use_keep, block_rows=tb)

    out2 = pl.pallas_call(
        kernel,
        out_shape=jax.ShapeDtypeStruct((R, L), x.dtype),
        grid=(grid_n,),
        in_specs=in_specs,
        out_specs=pl.BlockSpec((tb, L), lambda b: (b, 0)),
        compiler_params=pltpu.CompilerParams(
            dimension_semantics=("parallel",),
            vmem_limit_bytes=vmem_limit),
    )(*args)

    return out2.reshape(N, C, H, W)


def _cutperm_pallas(x, aug_index, mask=None):
    """Runs the CutPerm Pallas kernel.  aug_index is a static Python int."""
    N, C, H, W = x.shape
    assert H % 2 == 0 and W % 2 == 0, "CutPerm Pallas kernel expects even H, W"
    # TODO(synk): odd H/W (torch's unequal halves) not implemented in the kernel.

    jig_h = (aug_index // 2) == 1
    jig_v = (aug_index % 2) == 1
    if not jig_h and not jig_v:
        return x                                      # identity (blend of x with x)

    R, L = N * C, H * W
    itemsize = np.dtype(x.dtype).itemsize
    vmem_cap = _vmem_capacity_bytes()
    tb = _pick_block_rows(R, L * itemsize, itemsize, vmem_cap)

    w_mid = W // 2
    base = (L // 2) if jig_h else 0                   # fold H swap into the rolls
    if jig_v:
        # out[p] = x[(p + base + w_mid) % L] if col(p) <  W/2
        #          x[(p + base - w_mid) % L] otherwise
        shifts = (_hw_shift(L - base - w_mid, L), _hw_shift(L - base + w_mid, L))
    else:
        shifts = (_hw_shift(L - base, L),)            # == L/2 (self-inverse)

    return _cutperm_call(x, mask, shifts=shifts, tb=tb, vmem_cap=vmem_cap)


# ---------------------------------------------------------------------------
# Module
# ---------------------------------------------------------------------------

class CutPerm:
    """JAX/Pallas port of the PyTorch CutPerm augmentation module."""

    def __init__(self, max_range=4):
        self.max_range = max_range
        self.prob = 0.5

    def __call__(self, x, aug_index=None, key=None):
        N = x.shape[0]
        if aug_index is None:
            # Host-side draw, mirroring np.random.randint(4) (no device sync).
            aug_index = int(np.random.randint(4))
            if key is None:
                key = jax.random.PRNGKey(int(np.random.randint(2 ** 31 - 1)))
            keep = jax.random.bernoulli(key, self.prob, (N,))
            if aug_index == 0:
                # perm == x, so mask*x + (1-mask)*x == x exactly: skip kernel.
                return x
            return _cutperm_pallas(x, aug_index, mask=keep)
        aug_index = int(aug_index) % self.max_range
        if aug_index == 0:
            return x                                  # identity: skip kernel
        return _cutperm_pallas(x, aug_index, mask=None)


# ---------------------------------------------------------------------------
# Reference + tests
# ---------------------------------------------------------------------------

def _cutperm_ref(x, aug_index):
    """Pure-JAX reference of torch _cutperm for verification."""
    _, _, H, W = x.shape
    h_mid, w_mid = H // 2, W // 2
    out = x
    if (aug_index // 2) == 1:
        out = jnp.concatenate([out[:, :, h_mid:, :], out[:, :, :h_mid, :]], axis=2)
    if (aug_index % 2) == 1:
        out = jnp.concatenate([out[:, :, :, w_mid:], out[:, :, :, :w_mid]], axis=3)
    return out


if __name__ == "__main__":
    key = jax.random.PRNGKey(0)
    kx, kx2, kmask, kmask2, kbern = jax.random.split(key, 5)

    module = CutPerm()

    # --- Small NCHW shape consistent with the module's conv-style input. ---
    x = jax.random.normal(kx, (2, 4, 16, 16), dtype=jnp.float32)

    # Deterministic path: all four aug indices checked against the reference.
    for aug in range(4):
        out = jax.block_until_ready(module(x, aug_index=aug))
        ref = _cutperm_ref(x, aug)
        assert out.shape == x.shape and out.dtype == x.dtype
        assert bool(jnp.array_equal(out, ref)), f"mismatch for aug_index={aug}"

    # Masked mixing (random-path math) against the torch blend formula.
    keep = jax.random.bernoulli(kmask, 0.5, (x.shape[0],))
    for aug in (1, 2, 3):
        out_m = jax.block_until_ready(_cutperm_pallas(x, aug, mask=keep))
        m = keep.astype(x.dtype).reshape(-1, 1, 1, 1)
        ref_m = m * x + (1.0 - m) * _cutperm_ref(x, aug)
        assert bool(jnp.array_equal(out_m, ref_m)), f"masked mismatch aug={aug}"

    # --- Multi-block grid (partial last block + resident keep-mask slice). ---
    x2 = jax.random.normal(kx2, (3, 7, 16, 16), dtype=jnp.float32)
    for aug in (1, 2, 3):
        out = jax.block_until_ready(module(x2, aug_index=aug))
        assert bool(jnp.array_equal(out, _cutperm_ref(x2, aug))), \
            f"multi-block mismatch aug={aug}"
    keep2 = jax.random.bernoulli(kmask2, 0.5, (x2.shape[0],))
    out_m2 = jax.block_until_ready(_cutperm_pallas(x2, 3, mask=keep2))
    m2 = keep2.astype(x2.dtype).reshape(-1, 1, 1, 1)
    ref_m2 = m2 * x2 + (1.0 - m2) * _cutperm_ref(x2, 3)
    assert bool(jnp.array_equal(out_m2, ref_m2)), "multi-block masked mismatch"

    # Random path end-to-end (host-drawn aug index + bernoulli mixing).
    np.random.seed(0)
    out_rand = jax.block_until_ready(module(x, aug_index=None, key=kbern))
    assert out_rand.shape == x.shape and out_rand.dtype == x.dtype

    print("KERNEL_OK")
</pallas_src>

<mosaic_0001>
module attributes {stable_mosaic.version = 11 : i64} {
  func.func @k(%arg0: memref<8x128xi32, #tpu.memory_space<vmem>>, %arg1: memref<8x128xi32, #tpu.memory_space<vmem>>) attributes {dimension_semantics = [], scalar_prefetch = 0 : i64, scratch_operands = 0 : i64, tpu.core_type = #tpu.core_type<tc>} {
    %c0 = arith.constant 0 : index
    %c0_0 = arith.constant 0 : index
    %0 = vector.load %arg0[%c0, %c0_0] : memref<8x128xi32, #tpu.memory_space<vmem>>, vector<8x128xi32>
    %c1_i32 = arith.constant 1 : i32
    %1 = tpu.dynamic_rotate %0 by %c1_i32 dim 1 : vector<8x128xi32>, i32 -> vector<8x128xi32>
    %c0_1 = arith.constant 0 : index
    %c0_2 = arith.constant 0 : index
    %2 = vector.load %arg1[%c0_1, %c0_2] : memref<8x128xi32, #tpu.memory_space<vmem>>, vector<8x128xi32>
    tpu.vector_store %arg1[%c0_1, %c0_2], %1 {strides = array<i32>} : memref<8x128xi32, #tpu.memory_space<vmem>>, vector<8x128xi32>,
    return
  }
}

</mosaic_0001>

<bundles_post_ra>
// kernel: tpu_custom_call.1
= control target key start
LH: loop header
LB: loop body
LE: loop exit
PB: predicated region body
PF: predicated region fallthrough
CT: control target
= control target key end

     0   :  { %6 = vsyncpa [#allocation3], 0  ;;  %s106_s0 = inlined_call_operand.hbm [shape: s32[8,128], index: 0, kind: input, shape index: {}]   ;;  %s107_s1 = inlined_call_operand.hbm [shape: s32[8,128], index: 1, kind: output, shape index: {}]  }
   0x1   :  { %7 = vsyncpa [#allocation4], 0  ;;  %s87_s6 = smov [#allocation2]  }
   0x2   :  { %s14_s7 = sshll.u32 %s87_s6, 4  ;;  %s15_s7 = int_to_ptr.vmem [resolvable:$true] %s14_s7 }
   0x3   :  { %s51_s8 = scalar_lea.vmem %s15_s7, 128  ;;  %p56_p1 = scmp.lt.s32.totalorder %s15_s7, %s15_s7 }
   0x4   :  { %p52_p0 = scmp.ne.s32.totalorder %s15_s7, %s51_s8  ;;  %p57_p2 = scmp.lt.s32.totalorder %s51_s8, %s51_s8 }
   0x6   :  { %p58_p3 = por %p57_p2, %p56_p1 }
   0x8   :  { %p59_p4 = pnand %p58_p3, %p52_p0 }
   0xa   :  { %62 = shalt.err (!%p59_p4)
}
   0xb   :  { %17 = dma.hbm_to_vmem [thread:$0]  %s106_s0, 128, %s15_s7, [#allocation3]  }
   0xc   :  { %83 = dma.done.wait [#allocation3], 128  }
   0xd   :  { %84 = vsyncadd [#allocation3], 4294967168  ;;  %v21_v0 = vld [vmem:[#allocation2] sm:$0xff]  ;;  %s88_s11 = smov 1   ;;  %s89_s12 = smov [#allocation5]  }
   0xe   :  { %22 = vrot.lane.b32.xlu0 %v21_v0, %s88_s11  ;;  %s31_s13 = sshll.u32 %s89_s12, 4  ;;  %s32_s13 = int_to_ptr.vmem [resolvable:$true] %s31_s13 }
   0xf   :  { %s63_s14 = scalar_lea.vmem %s32_s13, 128  ;;  %p68_p6 = scmp.lt.s32.totalorder %s32_s13, %s32_s13 }
  0x10   :  { %p64_p5 = scmp.ne.s32.totalorder %s32_s13, %s63_s14  ;;  %p69_p7 = scmp.lt.s32.totalorder %s63_s14, %s63_s14 }
  0x12   :  { %p70_p8 = por %p69_p7, %p68_p6 }
  0x14   :  { %p71_p9 = pnand %p70_p8, %p64_p5 }
  0x80   :  { %v23_v1 = vpop.permute.xlu0 %22 }
  0x81   :  { %24 = vst [vmem:[#allocation5] sm:$0xff] %v23_v1 }
  0x82   :  { %74 = shalt.err (!%p71_p9)
}
  0x83   :  { %34 = dma.vmem_to_hbm [thread:$0]  %s32_s13, 128, %s107_s1, [#allocation4]  }
  0x84   :  { %85 = dma.done.wait [#allocation4], 128  }
  0x85   :  { %86 = vsyncadd [#allocation4], 4294967168 }
  0x86   :  { %38 = vsyncpa [#allocation3], 1 }
  0x87   :  { %39 = vsyncpa [#allocation4], 1 }

</bundles_post_ra>
